<compile_context>
chip_gen: v7x
topology: tpu7x:2x2x1
jax: 0.10.0
libtpu: 0.0.40
codegen_flags: <defaults>
</compile_context>

<pallas_src>
import functools

import jax
import jax.numpy as jnp
from jax import lax
from jax.experimental import pallas as pl
from jax.experimental.pallas import tpu as pltpu


# Each grid step writes its partial sum broadcast into one full (8, 128) f32
# block -> unmasked, lane-dense vector stores and no cross-tile write races.
_OUT_SUB = 8
_OUT_LANE = 128


def _spherical_kernel(x_ref, t_ref, out_ref, *, n_total, block_b, is_logit,
                      targets_are_labels, ragged):
    """One grid step: a (block_b, C) tile -> one scalar partial sum.

    x_ref  : (block_b, C) float    -- logits or probabilities (native dtype)
    t_ref  : (block_b, 1) int32    -- class labels        (targets_are_labels)
             (block_b, C) float    -- target distribution (otherwise)
    out_ref: (8, 128) float32      -- this tile's partial sum of
                                      sum_c normed_p * y (un-negated, un-averaged),
                                      broadcast across the whole block.
    """
    i = pl.program_id(0)
    x = x_ref[...].astype(jnp.float32)                       # (block_b, C)

    if is_logit:
        # Numerically stable un-normalized softmax: the softmax denominator is a
        # per-row uniform scale that cancels exactly under the L2 normalization
        # below, so it is omitted entirely.
        m = jnp.max(x, axis=-1, keepdims=True)
        p = jnp.exp(x - m)
    else:
        p = x

    # L2-normalize predictions along the class axis (EUP rsqrt, VPU multiply).
    sumsq = jnp.sum(p * p, axis=-1, keepdims=True)
    normed_p = p * lax.rsqrt(sumsq)

    if targets_are_labels:
        # One-hot built in-kernel: compare lane iota against the label column.
        lane = lax.broadcasted_iota(jnp.int32, x.shape, 1)    # (block_b, C)
        tv = (lane == t_ref[...]).astype(jnp.float32)
    else:
        tv = t_ref[...].astype(jnp.float32)

    contrib = jnp.sum(normed_p * tv, axis=-1, keepdims=True)  # (block_b, 1)

    def _write(c):
        out_ref[...] = jnp.full((_OUT_SUB, _OUT_LANE), jnp.sum(c),
                                dtype=out_ref.dtype)

    if ragged:
        # Only the last tile reads past the end of the batch (Pallas partial
        # block); mask those rows there and skip the mask everywhere else.
        is_last = i == pl.num_programs(0) - 1

        @pl.when(jnp.logical_not(is_last))
        def _():
            _write(contrib)

        @pl.when(is_last)
        def _():
            row = lax.broadcasted_iota(jnp.int32, (block_b, 1), 0) + i * block_b
            _write(jnp.where(row < n_total, contrib, 0.0))
    else:
        _write(contrib)


def _vmem_capacity_bytes():
    """Physical VMEM per TensorCore, with a conservative (v7x) fallback."""
    try:
        info = pltpu.get_tpu_info()
        for attr in ("vmem_capacity_bytes", "vmem_size_bytes", "vmem_bytes"):
            v = getattr(info, attr, None)
            if v:
                return int(v)
    except Exception:
        pass
    return 64 << 20


def _choose_block_b(B, C, in_dtype, tgt_dtype, targets_are_labels):
    """Footprint-accurate row-tile choice + scoped VMEM limit.

    Working set per row of a tile:
      * double-buffered input at native width over the lane-padded class dim,
      * double-buffered targets (int32 label column or distribution row),
      * ~3 tile-sized f32 temporaries Mosaic must materialize for the row
        reductions (exp/product intermediates).
    """
    vmem = _vmem_capacity_bytes()
    if vmem >= (96 << 20):          # v5e / v6e: 128 MiB physical VMEM
        tile_budget = 72 << 20
        vmem_limit = 100 << 20
        row_cap = 8192
    else:                           # v7x: 64 MiB per TensorCore
        tile_budget = 36 << 20
        vmem_limit = 48 << 20
        row_cap = 4096

    c_lanes = ((C + 127) // 128) * 128
    in_item = jnp.dtype(in_dtype).itemsize
    per_row = 2 * in_item * c_lanes + 3 * 4 * c_lanes
    if targets_are_labels:
        per_row += 2 * 4 * 128                       # (block_b, 1) i32, lane-padded
    else:
        per_row += 2 * jnp.dtype(tgt_dtype).itemsize * c_lanes

    block_b = tile_budget // per_row
    block_b = max(16, min(row_cap, (block_b // 16) * 16))
    b_ceil = ((B + 15) // 16) * 16                   # don't over-size tiny batches
    # TODO(synk): for extremely large C (>~100K classes) even block_b=16 can
    # exceed the budget; a class-chunked online-softmax fallback would degrade
    # gracefully instead of relying on the scoped-VMEM headroom.
    return min(block_b, b_ceil), vmem_limit


def spherical_score_loss(inputs_, targets, is_logit=True, block_b=None):
    """JAX/Pallas equivalent of SphericalScoreLoss.forward."""
    B, C = inputs_.shape
    targets_are_labels = not (targets.ndim == inputs_.ndim
                              and targets.shape[-1] == C)

    auto_block_b, vmem_limit = _choose_block_b(
        B, C, inputs_.dtype, targets.dtype, targets_are_labels)
    if block_b is None:
        block_b = auto_block_b
    else:
        block_b = max(16, ((block_b + 15) // 16) * 16)

    num_tiles = (B + block_b - 1) // block_b
    ragged = (B % block_b) != 0

    # Targets: labels become a (B, 1) int32 column; distributions are passed at
    # native dtype and upcast inside the kernel (keeps HBM traffic narrow).
    if targets_are_labels:
        t_arr = targets.reshape(B, 1)
        if t_arr.dtype != jnp.int32:
            t_arr = t_arr.astype(jnp.int32)
        t_spec = pl.BlockSpec((block_b, 1), lambda i: (i, 0))
    else:
        t_arr = targets
        t_spec = pl.BlockSpec((block_b, C), lambda i: (i, 0))

    kernel = functools.partial(
        _spherical_kernel,
        n_total=B,
        block_b=block_b,
        is_logit=is_logit,
        targets_are_labels=targets_are_labels,
        ragged=ragged,
    )

    in_bytes = inputs_.size * inputs_.dtype.itemsize
    tgt_bytes = t_arr.size * t_arr.dtype.itemsize
    out_bytes = num_tiles * _OUT_SUB * _OUT_LANE * 4
    cost = pl.CostEstimate(
        flops=6 * B * C,
        transcendentals=(B * C if is_logit else 0) + B,
        bytes_accessed=in_bytes + tgt_bytes + out_bytes,
    )

    # NOTE: for very small C (< 128) a lane-dense fold of several rows into one
    # 128-lane row would raise VPU/EUP lane utilization (matters mostly on v7x);
    # not done here to keep the reductions on a plain last axis.
    partials = pl.pallas_call(
        kernel,
        out_shape=jax.ShapeDtypeStruct((num_tiles * _OUT_SUB, _OUT_LANE),
                                       jnp.float32),
        grid_spec=pl.GridSpec(
            grid=(num_tiles,),
            in_specs=[
                pl.BlockSpec((block_b, C), lambda i: (i, 0)),
                t_spec,
            ],
            out_specs=pl.BlockSpec((_OUT_SUB, _OUT_LANE), lambda i: (i, 0)),
        ),
        compiler_params=pltpu.CompilerParams(
            # Each tile owns its own output block -> race-free; lets v7x shard
            # the batch axis across both TensorCores.
            dimension_semantics=("parallel",),
            vmem_limit_bytes=vmem_limit,
        ),
        cost_estimate=cost,
    )(inputs_, t_arr)

    # Each tile sum is broadcast over all 8*128 elements of its block, so a
    # single dense reduction (no strided gather) recovers sum_of_tiles * 1024.
    return -jnp.sum(partials) / (jnp.float32(B) * (_OUT_SUB * _OUT_LANE))


def _reference_spherical(inputs_, targets, is_logit=True):
    """Pure-JAX reference mirroring the PyTorch SphericalScoreLoss module."""
    C = inputs_.shape[1]
    if targets.ndim != inputs_.ndim or targets.shape[-1] != C:
        tv = jax.nn.one_hot(targets, C, dtype=jnp.float32)
    else:
        tv = targets.astype(jnp.float32)
    x = inputs_.astype(jnp.float32)
    p = jax.nn.softmax(x, axis=-1) if is_logit else x
    normed = p / jnp.linalg.norm(p, axis=-1, keepdims=True)
    return jnp.mean(-jnp.sum(normed * tv, axis=-1))


if __name__ == "__main__":
    key = jax.random.PRNGKey(0)
    k1, k2, k3, k4 = jax.random.split(key, 4)

    # 1) logits + integer labels (is_logit=True)
    B, C = 16, 32
    logits = jax.random.normal(k1, (B, C), dtype=jnp.float32)
    labels = jax.random.randint(k2, (B,), 0, C, dtype=jnp.int32)
    loss = jax.block_until_ready(spherical_score_loss(logits, labels, is_logit=True))
    ref = _reference_spherical(logits, labels, is_logit=True)
    assert jnp.allclose(loss, ref, rtol=1e-5, atol=1e-5), (loss, ref)

    # 2) probabilities + one-hot/soft targets (is_logit=False)
    probs = jax.nn.softmax(logits, axis=-1)
    tv = jax.nn.one_hot(labels, C, dtype=jnp.float32)
    loss2 = jax.block_until_ready(spherical_score_loss(probs, tv, is_logit=False))
    ref2 = _reference_spherical(probs, tv, is_logit=False)
    assert jnp.allclose(loss2, ref2, rtol=1e-5, atol=1e-5), (loss2, ref2)

    # 3) multi-tile path: several per-tile partials reduced in the wrapper
    B3 = 48
    logits3 = jax.random.normal(k3, (B3, C), dtype=jnp.float32)
    labels3 = jax.random.randint(k4, (B3,), 0, C, dtype=jnp.int32)
    loss3 = jax.block_until_ready(
        spherical_score_loss(logits3, labels3, is_logit=True, block_b=16))
    ref3 = _reference_spherical(logits3, labels3, is_logit=True)
    assert jnp.allclose(loss3, ref3, rtol=1e-5, atol=1e-5), (loss3, ref3)

    # 4) ragged batch: exercises the partial last block + in-kernel row masking
    B4, C4 = 13, 10
    logits4 = jax.random.normal(k1, (B4, C4), dtype=jnp.float32)
    labels4 = jax.random.randint(k2, (B4,), 0, C4, dtype=jnp.int32)
    loss4 = jax.block_until_ready(spherical_score_loss(logits4, labels4, is_logit=True))
    ref4 = _reference_spherical(logits4, labels4, is_logit=True)
    assert jnp.allclose(loss4, ref4, rtol=1e-5, atol=1e-5), (loss4, ref4)

    # 5) ragged multi-tile + bf16 inputs (native-width HBM reads, in-kernel cast)
    B5 = 40
    logits5 = jax.random.normal(k3, (B5, C), dtype=jnp.bfloat16)
    labels5 = jax.random.randint(k4, (B5,), 0, C, dtype=jnp.int32)
    loss5 = jax.block_until_ready(
        spherical_score_loss(logits5, labels5, is_logit=True, block_b=16))
    ref5 = _reference_spherical(logits5, labels5, is_logit=True)
    assert jnp.allclose(loss5, ref5, rtol=2e-2, atol=2e-2), (loss5, ref5)

    print("KERNEL_OK")
</pallas_src>

<mosaic_0001>
module attributes {stable_mosaic.version = 11 : i64} {
  func.func @_spherical_kernel(%arg0: i32, %arg1: memref<16x32xf32, #tpu.memory_space<vmem>>, %arg2: memref<16x1xi32, #tpu.memory_space<vmem>>, %arg3: memref<8x128xf32, #tpu.memory_space<vmem>>) attributes {dimension_semantics = [#tpu.dimension_semantics<parallel>], iteration_bounds = array<i64: 1>, scalar_prefetch = 0 : i64, scratch_operands = 0 : i64, tpu.core_type = #tpu.core_type<tc>, window_params = [{transform_indices = @transform_0, window_bounds = array<i64: 16, 32>}, {transform_indices = @transform_1, window_bounds = array<i64: 16, 1>}, {transform_indices = @transform_2, window_bounds = array<i64: 8, 128>}]} {
    %c0 = arith.constant 0 : index
    %c0_0 = arith.constant 0 : index
    %0 = vector.load %arg1[%c0, %c0_0] : memref<16x32xf32, #tpu.memory_space<vmem>>, vector<16x32xf32>
    %cst = arith.constant dense<0xFF800000> : vector<16xf32>
    %1 = vector.multi_reduction <maximumf>, %0, %cst [1] : vector<16x32xf32> to vector<16xf32>
    %2 = vector.shape_cast %1 : vector<16xf32> to vector<16x1xf32>
    %3 = vector.broadcast %2 : vector<16x1xf32> to vector<16x32xf32>
    %4 = arith.subf %0, %3 : vector<16x32xf32>
    %5 = math.exp %4 : vector<16x32xf32>
    %6 = arith.mulf %5, %5 : vector<16x32xf32>
    %cst_1 = arith.constant dense<0.000000e+00> : vector<16xf32>
    %7 = vector.multi_reduction <add>, %6, %cst_1 [1] : vector<16x32xf32> to vector<16xf32>
    %8 = vector.shape_cast %7 : vector<16xf32> to vector<16x1xf32>
    %9 = math.rsqrt %8 : vector<16x1xf32>
    %10 = vector.broadcast %9 : vector<16x1xf32> to vector<16x32xf32>
    %11 = arith.mulf %5, %10 : vector<16x32xf32>
    %12 = tpu.iota {dimensions = array<i32: 1>} : vector<16x32xi32>
    %c0_2 = arith.constant 0 : index
    %c0_3 = arith.constant 0 : index
    %13 = vector.load %arg2[%c0_2, %c0_3] : memref<16x1xi32, #tpu.memory_space<vmem>>, vector<16x1xi32>
    %14 = vector.broadcast %13 : vector<16x1xi32> to vector<16x32xi32>
    %15 = arith.cmpi eq, %12, %14 : vector<16x32xi32>
    %16 = arith.extui %15 : vector<16x32xi1> to vector<16x32xi32>
    %17 = arith.sitofp %16 : vector<16x32xi32> to vector<16x32xf32>
    %18 = arith.mulf %11, %17 : vector<16x32xf32>
    %cst_4 = arith.constant dense<0.000000e+00> : vector<16xf32>
    %19 = vector.multi_reduction <add>, %18, %cst_4 [1] : vector<16x32xf32> to vector<16xf32>
    %20 = vector.shape_cast %19 : vector<16xf32> to vector<16x1xf32>
    %21 = vector.shape_cast %20 : vector<16x1xf32> to vector<1x16x1xf32>
    %cst_5 = arith.constant dense<0.000000e+00> : vector<1xf32>
    %22 = vector.multi_reduction <add>, %21, %cst_5 [1, 2] : vector<1x16x1xf32> to vector<1xf32>
    %23 = vector.shape_cast %22 : vector<1xf32> to vector<1x1x1xf32>
    %24 = vector.extract %23[0, 0, 0] : f32 from vector<1x1x1xf32>
    %25 = vector.broadcast %24 : f32 to vector<8x128xf32>
    %c0_6 = arith.constant 0 : index
    %c0_7 = arith.constant 0 : index
    %26 = vector.load %arg3[%c0_6, %c0_7] : memref<8x128xf32, #tpu.memory_space<vmem>>, vector<8x128xf32>
    tpu.vector_store %arg3[%c0_6, %c0_7], %25 {strides = array<i32>} : memref<8x128xf32, #tpu.memory_space<vmem>>, vector<8x128xf32>,
    return
  }
  func.func @transform_0(%arg0: i32) -> (i32, i32) {
    %c0_i32 = arith.constant 0 : i32
    %c0_i32_0 = arith.constant 0 : i32
    return %arg0, %c0_i32 : i32, i32
  }
  func.func @transform_1(%arg0: i32) -> (i32, i32) {
    %c0_i32 = arith.constant 0 : i32
    %c0_i32_0 = arith.constant 0 : i32
    return %arg0, %c0_i32 : i32, i32
  }
  func.func @transform_2(%arg0: i32) -> (i32, i32) {
    %c0_i32 = arith.constant 0 : i32
    %c0_i32_0 = arith.constant 0 : i32
    return %arg0, %c0_i32 : i32, i32
  }
}

</mosaic_0001>

<bundles_post_ra>
// kernel: tpu_custom_call.1
= control target key start
LH: loop header
LB: loop body
LE: loop exit
PB: predicated region body
PF: predicated region fallthrough
CT: control target
= control target key end

     0   :  { %vm14_vm0 = vcmask 261120   ;;  %s181_s0 = inlined_call_operand.vmem [shape: f32[16,32], index: 0, kind: input, shape index: {}]   ;;  %s182_s1 = inlined_call_operand.vmem [shape: s32[16,1], index: 1, kind: input, shape index: {}]   ;;  %s183_s2 = inlined_call_operand.hbm [shape: f32[8,128], index: 2, kind: output, shape index: {}]  }
   0x1   :  { %v12_v0 = vld [vmem:[%s181_s0] sm:$0xff]  ;;  %v13_v1 = vld [vmem:[%s181_s0 + $0x8] sm:$0xff] }
   0x2   :  { %7 = vsyncpa [#allocation3], 0  ;;  %v15_v2 = vsel %vm14_vm0, %v12_v0, -inf  ;;  %v18_v3 = vsel %vm14_vm0, %v13_v1, -inf  ;;  %v41_v4 = vld [vmem:[%s182_s1] sm:$0xff]  ;;  %v133_v5 = vmov 0   ;;  %v39_v20 = vlaneseq }
   0x3   :  { %16 = vmax.xlane.f32.xlu0 %v15_v2  ;;  %100 = vset.pattern.permute.xlu1 %v133_v5  ;;  %v42_v18 = vld [vmem:[%s182_s1 + $0x8] sm:$0xff]  ;;  %v134_v26 = vmov 0.0   ;;  %vm63_vm3 = vcmask 7168   ;;  %s135_s1 = smov [#allocation2]  }
   0x4   :  { %99 = vset.pattern.permute.xlu0 %v133_v5  ;;  %v40_v22 = vand.u32 127, %v39_v20  ;;  %s84_s16 = sshll.u32 %s135_s1, 4  ;;  %s85_s16 = int_to_ptr.vmem [resolvable:$true] %s84_s16 }
   0x5   :  { %s109_s18 = scalar_lea.vmem %s85_s16, 128  ;;  %p114_p1 = scmp.lt.s32.totalorder %s85_s16, %s85_s16 }
   0x6   :  { %p110_p0 = scmp.ne.s32.totalorder %s85_s16, %s109_s18  ;;  %p115_p2 = scmp.lt.s32.totalorder %s109_s18, %s109_s18 }
   0x7   :  { %19 = vmax.xlane.f32.xlu0 %v18_v3 }
   0x8   :  { %p116_p3 = por %p115_p2, %p114_p1 }
   0xa   :  { %p117_p4 = pnand %p116_p3, %p110_p0 }
  0x1d   :  { %44 = vperm.xlu0 %99, %v41_v4  }
  0x90   :  { %v17_v6 = vpop.xlane.xlu0 %16 }
  0x91   :  { %v21_v7 = vsub.f32 %v12_v0, %v17_v6 }
  0x93   :  { %v23_v8 = vmul.f32 1.442695, %v21_v7 }
  0x94   :  { %v20_v9 = vpop.xlane.xlu0 %19 }
  0x95   :  { %101 = vpow2.f32 %v23_v8  ;;  %v22_v10 = vsub.f32 %v13_v1, %v20_v9 }
  0x97   :  { %v25_v11 = vmul.f32 1.442695, %v22_v10 }
  0x99   :  { %103 = vpow2.f32 %v25_v11 }
  0x9c   :  { %v45_v23 = vpop.permute.xlu0 %44 }
  0x9d   :  { %vm49_vm1 = vcmp.eq.s32.totalorder %v40_v22, %v45_v23 }
  0x9e   :  { %v92_v27 = vsel %vm49_vm1, 1.0, %v134_v26 }
  0x9f   :  { %v102_v12 = vpop.eup %101 }
  0xa0   :  { %v27_v13 = vmul.f32 %v102_v12, %v102_v12 }
  0xa2   :  { %v29_v14 = vsel %vm14_vm0, %v27_v13, 0.0 }
  0xa3   :  { %v104_v15 = vpop.eup %103  ;;  %30 = vadd.xlane.f32.xlu1 %v29_v14 }
  0xa4   :  { %v28_v16 = vmul.f32 %v104_v15, %v104_v15 }
  0xa6   :  { %v32_v17 = vsel %vm14_vm0, %v28_v16, 0.0 }
  0xa7   :  { %33 = vadd.xlane.f32.xlu1 %v32_v17 }
  0xb8   :  { %47 = vperm.xlu1 %100, %v42_v18  }
 0x130   :  { %v31_v19 = vpop.xlane.xlu1 %30 }
 0x131   :  { %105 = vrsqrt.f32 %v31_v19 }
 0x134   :  { %v34_v21 = vpop.xlane.xlu1 %33 }
 0x135   :  { %107 = vrsqrt.f32 %v34_v21 }
 0x138   :  { %v48_v24 = vpop.permute.xlu1 %47 }
 0x139   :  { %vm50_vm2 = vcmp.eq.s32.totalorder %v40_v22, %v48_v24 }
 0x13a   :  { %v93_v31 = vsel %vm50_vm2, 1.0, %v134_v26 }
 0x13b   :  { %v106_v25 = vpop.eup %105 }
 0x13c   :  { %v37_v28 = vmul.f32 %v106_v25, %v102_v12 }
 0x13e   :  { %v55_v29 = vmul.f32 %v92_v27, %v37_v28 }
 0x13f   :  { %v108_v30 = vpop.eup %107 }
 0x140   :  { %v57_v32 = vsel %vm14_vm0, %v55_v29, 0.0  ;;  %v38_v33 = vmul.f32 %v108_v30, %v104_v15 }
 0x141   :  { %58 = vadd.xlane.f32.xlu1 %v57_v32 }
 0x142   :  { %v56_v34 = vmul.f32 %v93_v31, %v38_v33 }
 0x144   :  { %v60_v35 = vsel %vm14_vm0, %v56_v34, 0.0 }
 0x145   :  { %61 = vadd.xlane.f32.xlu0 %v60_v35 }
 0x1ce   :  { %v59_v36 = vpop.xlane.xlu1 %58 }
 0x1cf   :  { %v64_v38 = vsel %vm63_vm3, %v59_v36, 0.0 }
 0x1d2   :  { %v62_v37 = vpop.xlane.xlu0 %61 }
 0x1d3   :  { %v65_v39 = vsel %vm63_vm3, %v62_v37, 0.0 }
 0x1d4   :  { %v66_v40 = vadd.f32 %v65_v39, %v64_v38 }
 0x1d6   :  { %67 = vadd.xlane.f32.xlu1 %v66_v40 }
 0x263   :  { %v68_v41 = vpop.xlane.xlu1 %67 }
 0x264   :  { %v69_v42 = vrot.slane %v68_v41, 4 }
 0x266   :  { %v70_v43 = vadd.f32 %v69_v42, %v68_v41 }
 0x268   :  { %v71_v44 = vrot.slane %v70_v43, 2 }
 0x26a   :  { %v72_v45 = vadd.f32 %v71_v44, %v70_v43 }
 0x26c   :  { %v73_v46 = vrot.slane %v72_v45, 1 }
 0x26e   :  { %v74_v47 = vadd.f32 %v73_v46, %v72_v45 }
 0x270   :  { %94 = vpush %v74_v47 }
 0x2a1   :  { %s95_s17 = spop %94 }
 0x2a2   :  { %v76_v48 = vstv %s95_s17 }
 0x2a3   :  { %77 = vst [vmem:[#allocation2] sm:$0xff] %v76_v48 }
 0x2a4   :  { %120 = shalt.err (!%p117_p4)
}
 0x2a5   :  { %s121_s21 = scalar_lea.hbm %s183_s2, 128 }
 0x2a6   :  { %p122_p5 = scmp.ne.s32.totalorder %s183_s2, %s121_s21  ;;  %p125_p6 = scmp.lt.u32.totalorder %s121_s21, %s183_s2 }
 0x2a8   :  { %p127_p7 = pnand %p125_p6, %p122_p5 }
 0x2aa   :  { %130 = shalt.err (!%p127_p7)
}
 0x2ab   :  { %87 = dma.vmem_to_hbm [thread:$0]  %s85_s16, 128, %s183_s2, [#allocation3]  }
 0x2ac   :  { %131 = dma.done.wait [#allocation3], 128  }
 0x2ad   :  { %132 = vsyncadd [#allocation3], 4294967168 }
 0x2ae   :  { %91 = vsyncpa [#allocation3], 1 }

</bundles_post_ra>
